<compile_context>
chip_gen: v6e
topology: v6e:2x2x1
jax: 0.10.0
libtpu: 0.0.40
codegen_flags: <defaults>
</compile_context>

<pallas_src>
import functools

import jax
import jax.numpy as jnp
from jax import lax
from jax.experimental import pallas as pl
from jax.experimental.pallas import tpu as pltpu

_PAD_LABEL = -(2**31) + 7  # sentinel for padded rows; must differ from real labels


def _contrastive_tile_kernel(xi_ref, xj_ref, tcol_ref, trow_ref, out_ref,
                             *accs, margin, mean):
    i = pl.program_id(0)
    j = pl.program_id(1)
    nj = pl.num_programs(1)

    @pl.when(j == 0)
    def _init():
        for a in accs:
            a[...] = jnp.zeros_like(a)

    xi = xi_ref[...]                       # (TM, D) compute dtype
    xj = xj_ref[...]                       # (TN, D) compute dtype
    bm = xi.shape[0]
    bn = xj.shape[0]
    lanes = accs[0].shape[1]

    # A @ B.T without materializing a transpose: contract last dims on the MXU.
    sim = lax.dot_general(xi, xj, (((1,), (1,)), ((), ())),
                          preferred_element_type=jnp.float32)   # (TM, TN) f32

    t_i = tcol_ref[...]                    # (TM, 1) int32
    t_j = trow_ref[...]                    # (1, TN) int32
    same = t_i == t_j                      # (TM, TN) bool
    valid_j = t_j != _PAD_LABEL            # (1, TN) bool — masks padded columns

    # Exact self-pair removal: mask the global diagonal out of the pos mask.
    # Tile-local condition: row == col + (j*TN - i*TM).  All-false on tiles
    # that do not intersect the diagonal, so no pl.when gate is needed.
    row_ids = lax.broadcasted_iota(jnp.int32, (bm, bn), 0)
    col_ids = lax.broadcasted_iota(jnp.int32, (bm, bn), 1)
    off = j * bn - i * bm
    not_diag = row_ids != (col_ids + off)

    pos_mask = jnp.logical_and(same, not_diag)
    neg_mask = jnp.logical_and(jnp.logical_not(same),
                               jnp.logical_and(sim > margin, valid_j))

    def fold(v):
        # (TM, TN) -> (TM, lanes) by summing 128-lane groups: pure VPU adds,
        # slices at 128-lane boundaries are free vreg selections (no XLU).
        out = v[:, :lanes]
        for s in range(1, bn // lanes):
            out = out + v[:, s * lanes:(s + 1) * lanes]
        return out

    if mean:
        acc_pos, acc_neg, acc_pcnt, acc_ncnt = accs
        acc_pos[...] += fold(jnp.where(pos_mask, 1.0 - sim, 0.0))
        acc_neg[...] += fold(jnp.where(neg_mask, sim, 0.0))
        acc_pcnt[...] += fold(pos_mask.astype(jnp.float32))
        acc_ncnt[...] += fold(neg_mask.astype(jnp.float32))
    else:
        (acc,) = accs
        contrib = jnp.where(pos_mask, 1.0 - sim,
                            jnp.where(neg_mask, sim, 0.0))
        acc[...] += fold(contrib)

    # Cross-lane reduction + per-row store only once per i-block.
    @pl.when(j == nj - 1)
    def _finalize():
        if mean:
            acc_pos, acc_neg, acc_pcnt, acc_ncnt = accs
            pos_sum = jnp.sum(acc_pos[...], axis=1, keepdims=True)
            neg_sum = jnp.sum(acc_neg[...], axis=1, keepdims=True)
            pos_cnt = jnp.sum(acc_pcnt[...], axis=1, keepdims=True)
            neg_cnt = jnp.sum(acc_ncnt[...], axis=1, keepdims=True)
            pos_term = pos_sum / jnp.maximum(pos_cnt, 1.0)
            neg_term = jnp.where(neg_cnt > 0.0,
                                 neg_sum / jnp.maximum(neg_cnt, 1.0),
                                 0.0)
            out_ref[...] = pos_term + neg_term
        else:
            (acc,) = accs
            out_ref[...] = jnp.sum(acc[...], axis=1, keepdims=True)


def _round_up(a, b):
    return ((a + b - 1) // b) * b


def contrastive_loss(inputs, targets, margin=0.5, mean=False, *,
                     block_m=512, block_n=256, compute_dtype=jnp.bfloat16,
                     xj_buffers=2):
    """Pallas-backed ContrastiveLoss forward.

    inputs: (N, D) features, targets: (N,) int labels.
    block_m: row tile TM (raise to 768-1024 on v6e; 256-512 on v5e; 384-512 on v7x).
    block_n: column tile TN (128 on v5e, 256 on v6e/v7x).
    compute_dtype: MXU operand dtype (bf16 default; f32 is an accuracy knob).
    xj_buffers: pipeline depth for the streamed column blocks (3 helps on v5e).
    """
    n, d = inputs.shape
    x = inputs.astype(compute_dtype)
    t = targets.astype(jnp.int32)

    if n <= block_n:
        bm = bn = n                       # single tile: full-dim blocks are legal
        n_pad = n
    else:
        if block_m % 128 != 0 or block_n % 128 != 0:
            raise ValueError("block_m/block_n must be multiples of 128 when n > block_n")
        bn = block_n
        n_pad = pl.cdiv(n, bn) * bn
        # Largest row tile that is a multiple of bn, divides n_pad, and <= block_m.
        bm = bn
        k = min(block_m, n_pad) // bn
        while k >= 1:
            if n_pad % (k * bn) == 0:
                bm = k * bn
                break
            k -= 1

    if n_pad != n:
        x = jnp.pad(x, ((0, n_pad - n), (0, 0)))
        t = jnp.pad(t, (0, n_pad - n), constant_values=_PAD_LABEL)

    t_col = t.reshape(n_pad, 1)           # i-side labels (tiny column)
    t_row = t.reshape(1, n_pad)           # j-side labels (lane-dense row)
    ni = n_pad // bm
    nj = n_pad // bn
    lanes = 128 if (bn % 128 == 0) else bn
    num_acc = 4 if mean else 1

    kernel = functools.partial(_contrastive_tile_kernel,
                               margin=float(margin), mean=bool(mean))

    itemsize = jnp.dtype(compute_dtype).itemsize
    # xi is fetched once per i-block (its block index is invariant over j);
    # xj is re-streamed once per i-block.
    cost = pl.CostEstimate(
        flops=int(2 * n_pad * n_pad * d),
        transcendentals=0,
        bytes_accessed=int((ni + 1) * n_pad * d * itemsize + 3 * n_pad * 4),
    )

    xj_kwargs = {}
    if xj_buffers != 2:
        xj_kwargs["pipeline_mode"] = pl.Buffered(int(xj_buffers))

    in_specs = [
        pl.BlockSpec((bm, d), lambda i, j: (i, 0)),                # X row-block (i)
        pl.BlockSpec((bn, d), lambda i, j: (j, 0), **xj_kwargs),   # X col-block (j)
        pl.BlockSpec((bm, 1), lambda i, j: (i, 0)),                # labels, row-block
        pl.BlockSpec((1, bn), lambda i, j: (0, j)),                # labels, col-block
    ]
    scratch = [pltpu.VMEM((bm, lanes), jnp.float32)] * num_acc

    # VMEM budget derived from the tiles (double-buffered inputs + scratch +
    # lane-padded small blocks), clamped to v7x's 64 MiB physical VMEM.
    vmem_needed = (
        2 * bm * d * itemsize
        + max(2, xj_buffers) * bn * d * itemsize
        + num_acc * bm * _round_up(lanes, 128) * 4
        + 4 * bm * 128 * 4                       # out + t_col blocks, lane-padded
        + 4 * 8 * _round_up(bn, 128) * 4         # t_row blocks, sublane-padded
    )
    vmem_limit = int(min(64 << 20, max(32 << 20, 2 * vmem_needed + (4 << 20))))

    out = pl.pallas_call(
        kernel,
        out_shape=jax.ShapeDtypeStruct((n_pad, 1), jnp.float32),
        grid_spec=pltpu.PrefetchScalarGridSpec(
            num_scalar_prefetch=0,
            grid=(ni, nj),
            in_specs=in_specs,
            out_specs=pl.BlockSpec((bm, 1), lambda i, j: (i, 0)),
            scratch_shapes=scratch,
        ),
        compiler_params=pltpu.CompilerParams(
            dimension_semantics=("parallel", "arbitrary"),
            vmem_limit_bytes=vmem_limit,
        ),
        cost_estimate=cost,
    )(x, x, t_col, t_row)

    per_row = out[:n, 0]
    return jnp.sum(per_row) / jnp.float32(n)


def _reference_loss(inputs, targets, margin=0.5, mean=False,
                    compute_dtype=jnp.float32):
    """Pure-JAX mirror of the PyTorch forward (balanced-batch semantics)."""
    x = inputs.astype(compute_dtype)
    n = x.shape[0]
    sim = lax.dot_general(x, x, (((1,), (1,)), ((), ())),
                          preferred_element_type=jnp.float32)
    same = targets[:, None] == targets[None, :]
    eye = jnp.eye(n, dtype=bool)
    pos_mask = same & ~eye
    neg_sel = (~same) & (sim > margin)
    pos_sum = jnp.sum(jnp.where(pos_mask, 1.0 - sim, 0.0), axis=1)
    neg_sum = jnp.sum(jnp.where(neg_sel, sim, 0.0), axis=1)
    if mean:
        pos_cnt = pos_mask.sum(axis=1).astype(jnp.float32)
        neg_cnt = neg_sel.sum(axis=1).astype(jnp.float32)
        pos_term = pos_sum / jnp.maximum(pos_cnt, 1.0)
        neg_term = jnp.where(neg_cnt > 0.0, neg_sum / jnp.maximum(neg_cnt, 1.0), 0.0)
    else:
        pos_term, neg_term = pos_sum, neg_sum
    return jnp.sum(pos_term + neg_term) / n


if __name__ == "__main__":
    key = jax.random.PRNGKey(0)
    k1, k2 = jax.random.split(key)

    # --- small balanced batch of embeddings (single-tile path, bf16 default) ---
    n, d = 8, 32
    x = jax.random.normal(k1, (n, d), dtype=jnp.float32)
    x = x / jnp.linalg.norm(x, axis=1, keepdims=True)          # cosine-style features
    targets = jnp.array([0, 0, 1, 1, 2, 2, 3, 3], dtype=jnp.int32)

    for mean_flag in (False, True):
        out = jax.block_until_ready(
            contrastive_loss(x, targets, margin=0.5, mean=mean_flag))
        ref = _reference_loss(x, targets, margin=0.5, mean=mean_flag,
                              compute_dtype=jnp.bfloat16)
        assert jnp.allclose(out, ref, rtol=1e-4, atol=1e-4), (mean_flag, out, ref)

    # f32 operands remain available as an accuracy knob.
    out32 = jax.block_until_ready(
        contrastive_loss(x, targets, margin=0.5, mean=False,
                         compute_dtype=jnp.float32))
    ref32 = _reference_loss(x, targets, margin=0.5, mean=False,
                            compute_dtype=jnp.float32)
    assert jnp.allclose(out32, ref32, rtol=1e-5, atol=1e-5), (out32, ref32)

    # --- tiled + padded path: TM != TN, diagonal offsets, sentinel columns ---
    # Integer-valued features (scaled by a power of two) are exact in bf16 and
    # every similarity is exactly representable, so tiled vs. monolithic
    # accumulation match to float rounding of the final per-row terms.
    n2, d2 = 450, 64
    x2 = jax.random.randint(k2, (n2, d2), -3, 4).astype(jnp.float32) * 0.125
    targets2 = jnp.repeat(jnp.arange(9, dtype=jnp.int32), n2 // 9)   # balanced classes

    for mean_flag in (False, True):
        o = jax.block_until_ready(
            contrastive_loss(x2, targets2, margin=0.5, mean=mean_flag,
                             block_m=256, block_n=128))
        r = _reference_loss(x2, targets2, margin=0.5, mean=mean_flag,
                            compute_dtype=jnp.bfloat16)
        assert jnp.allclose(o, r, rtol=1e-4, atol=1e-4), (mean_flag, o, r)

    # Default (large-TM) tiles; negative margin exercises the padded-column
    # sentinel mask together with mean=True.
    o = jax.block_until_ready(
        contrastive_loss(x2, targets2, margin=-0.1, mean=True))
    r = _reference_loss(x2, targets2, margin=-0.1, mean=True,
                        compute_dtype=jnp.bfloat16)
    assert jnp.allclose(o, r, rtol=1e-4, atol=1e-4), (o, r)

    print("KERNEL_OK")
</pallas_src>

<mosaic_0001>
module attributes {stable_mosaic.version = 11 : i64} {
  func.func @_contrastive_tile_kernel(%arg0: i32, %arg1: i32, %arg2: memref<8x32xbf16, #tpu.memory_space<vmem>>, %arg3: memref<8x32xbf16, #tpu.memory_space<vmem>>, %arg4: memref<8x1xi32, #tpu.memory_space<vmem>>, %arg5: memref<1x8xi32, #tpu.memory_space<vmem>>, %arg6: memref<8x1xf32, #tpu.memory_space<vmem>>, %arg7: memref<8x8xf32, #tpu.memory_space<vmem>>) attributes {dimension_semantics = [#tpu.dimension_semantics<parallel>, #tpu.dimension_semantics<arbitrary>], iteration_bounds = array<i64: 1, 1>, scalar_prefetch = 0 : i64, scratch_operands = 1 : i64, tpu.core_type = #tpu.core_type<tc>, window_params = [{transform_indices = @transform_0, window_bounds = array<i64: 8, 32>}, {transform_indices = @transform_1, window_bounds = array<i64: 8, 32>}, {transform_indices = @transform_2, window_bounds = array<i64: 8, 1>}, {transform_indices = @transform_3, window_bounds = array<i64: 1, 8>}, {transform_indices = @transform_4, window_bounds = array<i64: 8, 1>}]} {
    %c0_i32 = arith.constant 0 : i32
    %0 = arith.cmpi eq, %arg1, %c0_i32 : i32
    %1 = arith.extui %0 : i1 to i32
    %c0_i32_0 = arith.constant 0 : i32
    %2 = arith.cmpi ne, %1, %c0_i32_0 : i32
    scf.if %2 {
      %cst_19 = arith.constant 0.000000e+00 : f32
      %39 = vector.broadcast %cst_19 : f32 to vector<8x8xf32>
      %c0_20 = arith.constant 0 : index
      %c0_21 = arith.constant 0 : index
      %40 = vector.load %arg7[%c0_20, %c0_21] : memref<8x8xf32, #tpu.memory_space<vmem>>, vector<8x8xf32>
      tpu.vector_store %arg7[%c0_20, %c0_21], %39 {strides = array<i32>} : memref<8x8xf32, #tpu.memory_space<vmem>>, vector<8x8xf32>,
    } else {
    }
    %c0 = arith.constant 0 : index
    %c0_1 = arith.constant 0 : index
    %3 = vector.load %arg2[%c0, %c0_1] : memref<8x32xbf16, #tpu.memory_space<vmem>>, vector<8x32xbf16>
    %c0_2 = arith.constant 0 : index
    %c0_3 = arith.constant 0 : index
    %4 = vector.load %arg3[%c0_2, %c0_3] : memref<8x32xbf16, #tpu.memory_space<vmem>>, vector<8x32xbf16>
    %cst = arith.constant dense<0.000000e+00> : vector<8x8xf32>
    %5 = tpu.matmul %3, %4, %cst {dimension_numbers = #tpu.dot_dimension_numbers<[1], [1], [0], [0], [0, 0, 1, 0], [], []>} : vector<8x32xbf16>, vector<8x32xbf16>, vector<8x8xf32> -> vector<8x8xf32>
    %c0_4 = arith.constant 0 : index
    %c0_5 = arith.constant 0 : index
    %6 = vector.load %arg4[%c0_4, %c0_5] : memref<8x1xi32, #tpu.memory_space<vmem>>, vector<8x1xi32>
    %c0_6 = arith.constant 0 : index
    %c0_7 = arith.constant 0 : index
    %7 = vector.load %arg5[%c0_6, %c0_7] : memref<1x8xi32, #tpu.memory_space<vmem>>, vector<1x8xi32>
    %8 = vector.broadcast %6 : vector<8x1xi32> to vector<8x8xi32>
    %9 = vector.broadcast %7 : vector<1x8xi32> to vector<8x8xi32>
    %10 = arith.cmpi eq, %8, %9 : vector<8x8xi32>
    %c-2147483641_i32 = arith.constant -2147483641 : i32
    %11 = vector.broadcast %c-2147483641_i32 : i32 to vector<1x8xi32>
    %12 = arith.cmpi ne, %7, %11 : vector<1x8xi32>
    %13 = tpu.iota {dimensions = array<i32: 0>} : vector<8x8xi32>
    %14 = tpu.iota {dimensions = array<i32: 1>} : vector<8x8xi32>
    %c8_i32 = arith.constant 8 : i32
    %15 = arith.muli %arg1, %c8_i32 : i32
    %c8_i32_8 = arith.constant 8 : i32
    %16 = arith.muli %arg0, %c8_i32_8 : i32
    %17 = arith.subi %15, %16 : i32
    %18 = vector.broadcast %17 : i32 to vector<8x8xi32>
    %19 = arith.addi %14, %18 : vector<8x8xi32>
    %20 = arith.cmpi ne, %13, %19 : vector<8x8xi32>
    %21 = arith.andi %10, %20 : vector<8x8xi1>
    %cst_9 = arith.constant dense<true> : vector<8x8xi1>
    %22 = arith.xori %10, %cst_9 : vector<8x8xi1>
    %cst_10 = arith.constant 5.000000e-01 : f32
    %23 = vector.broadcast %cst_10 : f32 to vector<8x8xf32>
    %24 = arith.cmpf ogt, %5, %23 : vector<8x8xf32>
    %25 = vector.broadcast %12 : vector<1x8xi1> to vector<8x8xi1>
    %26 = arith.andi %24, %25 : vector<8x8xi1>
    %27 = arith.andi %22, %26 : vector<8x8xi1>
    %cst_11 = arith.constant 1.000000e+00 : f32
    %28 = vector.broadcast %cst_11 : f32 to vector<8x8xf32>
    %29 = arith.subf %28, %5 : vector<8x8xf32>
    %cst_12 = arith.constant 0.000000e+00 : f32
    %30 = vector.broadcast %cst_12 : f32 to vector<8x8xf32>
    %31 = arith.select %27, %5, %30 : vector<8x8xi1>, vector<8x8xf32>
    %32 = arith.select %21, %29, %31 : vector<8x8xi1>, vector<8x8xf32>
    %c0_13 = arith.constant 0 : index
    %c0_14 = arith.constant 0 : index
    %33 = vector.load %arg7[%c0_13, %c0_14] : memref<8x8xf32, #tpu.memory_space<vmem>>, vector<8x8xf32>
    %34 = arith.addf %33, %32 : vector<8x8xf32>
    %c0_15 = arith.constant 0 : index
    %c0_16 = arith.constant 0 : index
    %35 = vector.load %arg7[%c0_15, %c0_16] : memref<8x8xf32, #tpu.memory_space<vmem>>, vector<8x8xf32>
    tpu.vector_store %arg7[%c0_15, %c0_16], %34 {strides = array<i32>} : memref<8x8xf32, #tpu.memory_space<vmem>>, vector<8x8xf32>,
    %c0_i32_17 = arith.constant 0 : i32
    %36 = arith.cmpi eq, %arg1, %c0_i32_17 : i32
    %37 = arith.extui %36 : i1 to i32
    %c0_i32_18 = arith.constant 0 : i32
    %38 = arith.cmpi ne, %37, %c0_i32_18 : i32
    scf.if %38 {
      %c0_19 = arith.constant 0 : index
      %c0_20 = arith.constant 0 : index
      %39 = vector.load %arg7[%c0_19, %c0_20] : memref<8x8xf32, #tpu.memory_space<vmem>>, vector<8x8xf32>
      %cst_21 = arith.constant dense<0.000000e+00> : vector<8xf32>
      %40 = vector.multi_reduction <add>, %39, %cst_21 [1] : vector<8x8xf32> to vector<8xf32>
      %41 = vector.shape_cast %40 : vector<8xf32> to vector<8x1xf32>
      %c0_22 = arith.constant 0 : index
      %c0_23 = arith.constant 0 : index
      %42 = vector.load %arg6[%c0_22, %c0_23] : memref<8x1xf32, #tpu.memory_space<vmem>>, vector<8x1xf32>
      tpu.vector_store %arg6[%c0_22, %c0_23], %41 {strides = array<i32>} : memref<8x1xf32, #tpu.memory_space<vmem>>, vector<8x1xf32>,
    } else {
    }
    return
  }
  func.func @transform_0(%arg0: i32, %arg1: i32) -> (i32, i32) {
    %c0_i32 = arith.constant 0 : i32
    %c0_i32_0 = arith.constant 0 : i32
    return %arg0, %c0_i32 : i32, i32
  }
  func.func @transform_1(%arg0: i32, %arg1: i32) -> (i32, i32) {
    %c0_i32 = arith.constant 0 : i32
    %c0_i32_0 = arith.constant 0 : i32
    return %arg1, %c0_i32 : i32, i32
  }
  func.func @transform_2(%arg0: i32, %arg1: i32) -> (i32, i32) {
    %c0_i32 = arith.constant 0 : i32
    %c0_i32_0 = arith.constant 0 : i32
    return %arg0, %c0_i32 : i32, i32
  }
  func.func @transform_3(%arg0: i32, %arg1: i32) -> (i32, i32) {
    %c0_i32 = arith.constant 0 : i32
    %c0_i32_0 = arith.constant 0 : i32
    return %c0_i32, %arg1 : i32, i32
  }
  func.func @transform_4(%arg0: i32, %arg1: i32) -> (i32, i32) {
    %c0_i32 = arith.constant 0 : i32
    %c0_i32_0 = arith.constant 0 : i32
    return %arg0, %c0_i32 : i32, i32
  }
}

</mosaic_0001>

<bundles_post_ra>
// kernel: tpu_custom_call.1
= control target key start
LH: loop header
LB: loop body
LE: loop exit
PB: predicated region body
PF: predicated region fallthrough
CT: control target
= control target key end

     0   :  { %vm26_vm0 = vcmask 261120   ;;  %v139_v0 = vmov 0.0   ;;  %vm140_vm1 = vmmov 0   ;;  %v141_v3 = vmov 0   ;;  %s186_s1 = inlined_call_operand.vmem [shape: bf16[8,32], index: 1, kind: input, shape index: {}]   ;;  %s187_s2 = inlined_call_operand.vmem [shape: s32[8,1], index: 2, kind: input, shape index: {}]   ;;  %s188_s0 = inlined_call_operand.vmem [shape: bf16[8,32], index: 0, kind: input, shape index: {}]   ;;  %s189_s3 = inlined_call_operand.vmem [shape: s32[1,8], index: 3, kind: input, shape index: {}]   ;;  %s190_s4 = inlined_call_operand.vmem [shape: f32[8,1], index: 4, kind: output, shape index: {}]  }
   0x1   :  { %128 = vmatprep.subr.bf16.mxu0 %v139_v0  ;;  %v25_v1 = vld [vmem:[%s186_s1] sm:$0xf]  ;;  %130 = vmatprep.mubr.msk.bf16.mxu0 %vm140_vm1, %v139_v0  ;;  %vm22_vm2 = vcmask 64512   ;;  %v78_v6 = vlaneseq  ;;  %vm142_vm6 = vmmov 1   ;;  %vm119_vm13 = vcmask 7168  }
   0x2   :  { %v31_v2 = vsel %vm26_vm0, %v25_v1, 0  ;;  %138 = vset.pattern.permute.xlu0 %v141_v3  ;;  %v73_v4 = vld [vmem:[%s187_s2] sm:$0xff]  ;;  %23 = vst.msk [vmem:[#allocation2] sm:$0xff] %vm22_vm2, %v139_v0 }
   0x3   :  { %129 = vmatpush3.bf16.xpose.msra.mxu0 %v31_v2  ;;  %76 = vperm.xlu0 %138, %v73_v4   ;;  %v24_v5 = vld [vmem:[%s188_s0] sm:$0xf]  ;;  %v79_v7 = vshrl.u32 %v78_v6, 7  ;;  %v87_v14 = vand.u32 127, %v78_v6 }
   0x4   :  { %v74_v8 = vld [vmem:[%s189_s3] sm:$0x1] }
   0x5   :  { %v80_v9 = vsub.s32 0, %v79_v7  ;;  %vm83_vm3 = vcmp.ne.s32.totalorder %v74_v8, 2147483655  ;;  %vm93_vm8 = vcmp.ne.s32.totalorder %v79_v7, %v87_v14 }
   0x6   :  { %v97_v10 = vsel %vm83_vm3, 1, %v141_v3 }
   0x7   :  { %v81_v11 = vrot.slane %v74_v8, %v80_v9  ;;  %v101_v13 = vrot.slane %v97_v10, %v80_v9 }
   0x9   :  { %vm102_vm5 = vcmp.eq.s32.totalorder %v101_v13, 1  ;;  %v108_v18 = vld [vmem:[#allocation2] sm:$0xff] }
   0xa   :  { %131 = vmatmul.mubr.msk.bf16.vlgmr.msra.gmra.mxu0 %vm26_vm0, %v24_v5 }
  0x7e   :  { %v77_v12 = vpop.permute.xlu0 %76 }
  0x7f   :  { %vm82_vm4 = vcmp.eq.s32.totalorder %v77_v12, %v81_v11 }
  0x80   :  { %vm95_vm7 = vmxor %vm82_vm4, %vm142_vm6 }
  0x81   :  { %vm94_vm12 = vmand %vm82_vm4, %vm93_vm8 }
  0xca   :  { %v67_v15 = vpop.f32.mrf.mxu0 }
  0xcb   :  { %vm96_vm9 = vcmp.gt.f32.partialorder %v67_v15, 0.5  ;;  %v105_v17 = vsub.f32 1.0, %v67_v15 }
  0xcc   :  { %vm103_vm10 = vmand %vm96_vm9, %vm102_vm5  ;;  %v132_v16 = vpop.f32.mrf.mxu0 }
  0xcd   :  { %vm104_vm11 = vmand %vm95_vm7, %vm103_vm10 }
  0xce   :  { %v106_v19 = vsel %vm104_vm11, %v67_v15, 0.0  ;;  %v70_v20 = vpop.f32.mrf.mxu0 }
  0xcf   :  { %v107_v21 = vsel %vm94_vm12, %v105_v17, %v106_v19 }
  0xd0   :  { %v133_v22 = vpop.f32.mrf.mxu0  ;;  %v109_v23 = vadd.f32 %v108_v18, %v107_v21 }
  0xd2   :  { %111 = vst.msk [vmem:[#allocation2] sm:$0xff] %vm22_vm2, %v109_v23 }
  0xd9   :  { %v115_v24 = vld [vmem:[#allocation2] sm:$0xff] }
  0xda   :  { %v116_v25 = vsel %vm22_vm2, %v115_v24, 0.0 }
  0xdb   :  { %117 = vadd.xlane.f32.xlu0 %v116_v25 }
 0x164   :  { %v118_v26 = vpop.xlane.xlu0 %117 }
 0x165   :  { %120 = vst.msk [vmem:[%s190_s4] sm:$0xff] %vm119_vm13, %v118_v26 }

</bundles_post_ra>
